<compile_context>
chip_gen: v7x
topology: tpu7x:2x2x1
jax: 0.10.0
libtpu: 0.0.40
codegen_flags: <defaults>
</compile_context>

<pallas_src>
import functools

import jax
import jax.numpy as jnp
from jax.experimental import pallas as pl
from jax.experimental.pallas import tpu as pltpu

INPUT_SIZE = 10
HIDDEN_SIZE = 20


def _round_up(v, m=8):
    return (v + m - 1) // m * m


def _rnn_kernel(x_ref, p_ref, out_ref, *, B, S, I, H, whh_off, b_off):
    """Whole sequence per call: one hoisted projection + unrolled recurrence.

    x_ref:  (B*S, I) f32 — batch-major flattening of the batch-first input.
    p_ref:  (P, H) f32 packed params:
              rows [0:I)              = W_ih^T
              rows [whh_off:whh_off+H) = W_hh^T
              row  b_off               = b_ih + b_hh
    out_ref: (B, S, H) f32
    """
    # Parameter slices (static, 8-aligned row starts), loaded once.
    wih = p_ref[0:I, :]                      # (I, H)
    whh = p_ref[whh_off:whh_off + H, :]      # (H, H)
    bias = p_ref[b_off:b_off + 1, :]         # (1, H)

    # Phase 1: non-recurrent input projection for ALL timesteps in a single
    # lane-dense matmul.
    xw = jnp.dot(x_ref[...], wih, preferred_element_type=jnp.float32) + bias  # (B*S, H)

    # One up-front relayout to time-major so the serial recurrence indexes a
    # leading axis (free vreg pick) instead of doing S sublane extracts.
    xw_sbh = jnp.swapaxes(xw.reshape(B, S, H), 0, 1)   # (S, B, H)

    # Phase 2: serial recurrence. Per step: one (B,H)@(H,H) MXU push + EUP tanh.
    # S is small and static -> fully unrolled; all indices static.
    h = jnp.zeros((B, H), jnp.float32)
    hs = []
    for t in range(S):
        h = jnp.tanh(xw_sbh[t]
                     + jnp.dot(h, whh, preferred_element_type=jnp.float32))
        hs.append(h)

    # Single batched writeback (one store / one HBM DMA) instead of S masked stores.
    out_ref[...] = jnp.stack(hs, axis=1).astype(out_ref.dtype)   # (B, S, H)


def simple_rnn_forward(x, w_ih, w_hh, b_ih, b_hh):
    """x: (B, S, I) float32 (batch-first). Returns (B, S, H) — same as PyTorch `out`."""
    B, S, I = x.shape
    H = w_ih.shape[0]

    # One-time parameter prep: pack everything into a single sublane-aligned slab.
    whh_off = _round_up(I)            # 8-aligned start of W_hh^T rows
    b_off = _round_up(whh_off + H)    # 8-aligned start of bias row
    p_rows = _round_up(b_off + 1)
    params = jnp.zeros((p_rows, H), jnp.float32)
    params = params.at[0:I, :].set(jnp.transpose(w_ih, (1, 0)))          # W_ih^T
    params = params.at[whh_off:whh_off + H, :].set(jnp.transpose(w_hh, (1, 0)))  # W_hh^T
    params = params.at[b_off, :].set(b_ih + b_hh)                        # combined bias

    # Free wrapper-side reshape: kernel sees x already as (B*S, I).
    x_flat = x.reshape(B * S, I)

    kernel = functools.partial(_rnn_kernel, B=B, S=S, I=I, H=H,
                               whh_off=whh_off, b_off=b_off)

    return pl.pallas_call(
        kernel,
        out_shape=jax.ShapeDtypeStruct((B, S, H), jnp.float32),
        in_specs=[
            pl.BlockSpec(memory_space=pltpu.MemorySpace.VMEM),   # x_flat
            pl.BlockSpec(memory_space=pltpu.MemorySpace.VMEM),   # packed params
        ],
        out_specs=pl.BlockSpec(memory_space=pltpu.MemorySpace.VMEM),
    )(x_flat, params)


def _rnn_reference(x, w_ih, w_hh, b_ih, b_hh):
    """Pure-JAX reference for correctness checking."""
    B, S, I = x.shape
    h = jnp.zeros((B, w_ih.shape[0]), jnp.float32)
    outs = []
    for t in range(S):
        h = jnp.tanh(x[:, t, :] @ w_ih.T + b_ih + h @ w_hh.T + b_hh)
        outs.append(h)
    return jnp.stack(outs, axis=1)


if __name__ == "__main__":
    key = jax.random.PRNGKey(0)
    k_x, k_wih, k_whh, k_bih, k_bhh = jax.random.split(key, 5)

    B, S, I, H = 2, 8, INPUT_SIZE, HIDDEN_SIZE

    # Deterministic parameter init (PyTorch-style uniform(-1/sqrt(H), 1/sqrt(H))).
    bound = 1.0 / jnp.sqrt(jnp.float32(H))
    x = jax.random.normal(k_x, (B, S, I), jnp.float32)
    w_ih = jax.random.uniform(k_wih, (H, I), jnp.float32, -bound, bound)
    w_hh = jax.random.uniform(k_whh, (H, H), jnp.float32, -bound, bound)
    b_ih = jax.random.uniform(k_bih, (H,), jnp.float32, -bound, bound)
    b_hh = jax.random.uniform(k_bhh, (H,), jnp.float32, -bound, bound)

    out = simple_rnn_forward(x, w_ih, w_hh, b_ih, b_hh)
    out = jax.block_until_ready(out)

    ref = _rnn_reference(x, w_ih, w_hh, b_ih, b_hh)
    assert out.shape == (B, S, H)
    assert jnp.allclose(out, ref, atol=1e-5, rtol=1e-5), "mismatch vs reference"

    print("KERNEL_OK")
</pallas_src>

<mosaic_0001>
module attributes {stable_mosaic.version = 11 : i64} {
  func.func @_rnn_kernel(%arg0: memref<16x10xf32, #tpu.memory_space<vmem>>, %arg1: memref<48x20xf32, #tpu.memory_space<vmem>>, %arg2: memref<2x8x20xf32, #tpu.memory_space<vmem>>) attributes {dimension_semantics = [], scalar_prefetch = 0 : i64, scratch_operands = 0 : i64, tpu.core_type = #tpu.core_type<tc>} {
    %c0 = arith.constant 0 : index
    %c0_0 = arith.constant 0 : index
    %0 = vector.load %arg1[%c0, %c0_0] : memref<48x20xf32, #tpu.memory_space<vmem>>, vector<10x20xf32>
    %c16 = arith.constant 16 : index
    %c0_1 = arith.constant 0 : index
    %1 = vector.load %arg1[%c16, %c0_1] : memref<48x20xf32, #tpu.memory_space<vmem>>, vector<20x20xf32>
    %c40 = arith.constant 40 : index
    %c0_2 = arith.constant 0 : index
    %2 = vector.load %arg1[%c40, %c0_2] : memref<48x20xf32, #tpu.memory_space<vmem>>, vector<1x20xf32>
    %c0_3 = arith.constant 0 : index
    %c0_4 = arith.constant 0 : index
    %3 = vector.load %arg0[%c0_3, %c0_4] : memref<16x10xf32, #tpu.memory_space<vmem>>, vector<16x10xf32>
    %cst = arith.constant dense<0.000000e+00> : vector<16x20xf32>
    %4 = tpu.matmul %3, %0, %cst {dimension_numbers = #tpu.dot_dimension_numbers<[1], [0], [0], [1], [0, 0, 1, 1], [], []>} : vector<16x10xf32>, vector<10x20xf32>, vector<16x20xf32> -> vector<16x20xf32>
    %5 = vector.broadcast %2 : vector<1x20xf32> to vector<16x20xf32>
    %6 = arith.addf %4, %5 : vector<16x20xf32>
    %7 = vector.shape_cast %6 : vector<16x20xf32> to vector<2x8x20xf32>
    %8 = tpu.transpose %7, [1, 0, 2] : vector<2x8x20xf32> -> vector<8x2x20xf32>
    %cst_5 = arith.constant 0.000000e+00 : f32
    %9 = vector.broadcast %cst_5 : f32 to vector<2x20xf32>
    %10 = vector.extract_strided_slice %8 {offsets = [0, 0, 0], sizes = [1, 2, 20], strides = [1, 1, 1]} : vector<8x2x20xf32> to vector<1x2x20xf32>
    %11 = vector.shape_cast %10 : vector<1x2x20xf32> to vector<2x20xf32>
    %cst_6 = arith.constant dense<0.000000e+00> : vector<2x20xf32>
    %12 = tpu.matmul %9, %1, %cst_6 {dimension_numbers = #tpu.dot_dimension_numbers<[1], [0], [0], [1], [0, 0, 1, 1], [], []>} : vector<2x20xf32>, vector<20x20xf32>, vector<2x20xf32> -> vector<2x20xf32>
    %13 = arith.addf %11, %12 : vector<2x20xf32>
    %14 = math.tanh %13 : vector<2x20xf32>
    %15 = vector.extract_strided_slice %8 {offsets = [1, 0, 0], sizes = [1, 2, 20], strides = [1, 1, 1]} : vector<8x2x20xf32> to vector<1x2x20xf32>
    %16 = vector.shape_cast %15 : vector<1x2x20xf32> to vector<2x20xf32>
    %cst_7 = arith.constant dense<0.000000e+00> : vector<2x20xf32>
    %17 = tpu.matmul %14, %1, %cst_7 {dimension_numbers = #tpu.dot_dimension_numbers<[1], [0], [0], [1], [0, 0, 1, 1], [], []>} : vector<2x20xf32>, vector<20x20xf32>, vector<2x20xf32> -> vector<2x20xf32>
    %18 = arith.addf %16, %17 : vector<2x20xf32>
    %19 = math.tanh %18 : vector<2x20xf32>
    %20 = vector.extract_strided_slice %8 {offsets = [2, 0, 0], sizes = [1, 2, 20], strides = [1, 1, 1]} : vector<8x2x20xf32> to vector<1x2x20xf32>
    %21 = vector.shape_cast %20 : vector<1x2x20xf32> to vector<2x20xf32>
    %cst_8 = arith.constant dense<0.000000e+00> : vector<2x20xf32>
    %22 = tpu.matmul %19, %1, %cst_8 {dimension_numbers = #tpu.dot_dimension_numbers<[1], [0], [0], [1], [0, 0, 1, 1], [], []>} : vector<2x20xf32>, vector<20x20xf32>, vector<2x20xf32> -> vector<2x20xf32>
    %23 = arith.addf %21, %22 : vector<2x20xf32>
    %24 = math.tanh %23 : vector<2x20xf32>
    %25 = vector.extract_strided_slice %8 {offsets = [3, 0, 0], sizes = [1, 2, 20], strides = [1, 1, 1]} : vector<8x2x20xf32> to vector<1x2x20xf32>
    %26 = vector.shape_cast %25 : vector<1x2x20xf32> to vector<2x20xf32>
    %cst_9 = arith.constant dense<0.000000e+00> : vector<2x20xf32>
    %27 = tpu.matmul %24, %1, %cst_9 {dimension_numbers = #tpu.dot_dimension_numbers<[1], [0], [0], [1], [0, 0, 1, 1], [], []>} : vector<2x20xf32>, vector<20x20xf32>, vector<2x20xf32> -> vector<2x20xf32>
    %28 = arith.addf %26, %27 : vector<2x20xf32>
    %29 = math.tanh %28 : vector<2x20xf32>
    %30 = vector.extract_strided_slice %8 {offsets = [4, 0, 0], sizes = [1, 2, 20], strides = [1, 1, 1]} : vector<8x2x20xf32> to vector<1x2x20xf32>
    %31 = vector.shape_cast %30 : vector<1x2x20xf32> to vector<2x20xf32>
    %cst_10 = arith.constant dense<0.000000e+00> : vector<2x20xf32>
    %32 = tpu.matmul %29, %1, %cst_10 {dimension_numbers = #tpu.dot_dimension_numbers<[1], [0], [0], [1], [0, 0, 1, 1], [], []>} : vector<2x20xf32>, vector<20x20xf32>, vector<2x20xf32> -> vector<2x20xf32>
    %33 = arith.addf %31, %32 : vector<2x20xf32>
    %34 = math.tanh %33 : vector<2x20xf32>
    %35 = vector.extract_strided_slice %8 {offsets = [5, 0, 0], sizes = [1, 2, 20], strides = [1, 1, 1]} : vector<8x2x20xf32> to vector<1x2x20xf32>
    %36 = vector.shape_cast %35 : vector<1x2x20xf32> to vector<2x20xf32>
    %cst_11 = arith.constant dense<0.000000e+00> : vector<2x20xf32>
    %37 = tpu.matmul %34, %1, %cst_11 {dimension_numbers = #tpu.dot_dimension_numbers<[1], [0], [0], [1], [0, 0, 1, 1], [], []>} : vector<2x20xf32>, vector<20x20xf32>, vector<2x20xf32> -> vector<2x20xf32>
    %38 = arith.addf %36, %37 : vector<2x20xf32>
    %39 = math.tanh %38 : vector<2x20xf32>
    %40 = vector.extract_strided_slice %8 {offsets = [6, 0, 0], sizes = [1, 2, 20], strides = [1, 1, 1]} : vector<8x2x20xf32> to vector<1x2x20xf32>
    %41 = vector.shape_cast %40 : vector<1x2x20xf32> to vector<2x20xf32>
    %cst_12 = arith.constant dense<0.000000e+00> : vector<2x20xf32>
    %42 = tpu.matmul %39, %1, %cst_12 {dimension_numbers = #tpu.dot_dimension_numbers<[1], [0], [0], [1], [0, 0, 1, 1], [], []>} : vector<2x20xf32>, vector<20x20xf32>, vector<2x20xf32> -> vector<2x20xf32>
    %43 = arith.addf %41, %42 : vector<2x20xf32>
    %44 = math.tanh %43 : vector<2x20xf32>
    %45 = vector.extract_strided_slice %8 {offsets = [7, 0, 0], sizes = [1, 2, 20], strides = [1, 1, 1]} : vector<8x2x20xf32> to vector<1x2x20xf32>
    %46 = vector.shape_cast %45 : vector<1x2x20xf32> to vector<2x20xf32>
    %cst_13 = arith.constant dense<0.000000e+00> : vector<2x20xf32>
    %47 = tpu.matmul %44, %1, %cst_13 {dimension_numbers = #tpu.dot_dimension_numbers<[1], [0], [0], [1], [0, 0, 1, 1], [], []>} : vector<2x20xf32>, vector<20x20xf32>, vector<2x20xf32> -> vector<2x20xf32>
    %48 = arith.addf %46, %47 : vector<2x20xf32>
    %49 = math.tanh %48 : vector<2x20xf32>
    %50 = vector.shape_cast %14 : vector<2x20xf32> to vector<2x1x20xf32>
    %51 = vector.shape_cast %19 : vector<2x20xf32> to vector<2x1x20xf32>
    %52 = vector.shape_cast %24 : vector<2x20xf32> to vector<2x1x20xf32>
    %53 = vector.shape_cast %29 : vector<2x20xf32> to vector<2x1x20xf32>
    %54 = vector.shape_cast %34 : vector<2x20xf32> to vector<2x1x20xf32>
    %55 = vector.shape_cast %39 : vector<2x20xf32> to vector<2x1x20xf32>
    %56 = vector.shape_cast %44 : vector<2x20xf32> to vector<2x1x20xf32>
    %57 = vector.shape_cast %49 : vector<2x20xf32> to vector<2x1x20xf32>
    %58 = tpu.concatenate %50, %51, %52, %53, %54, %55, %56, %57 in 1 : vector<2x1x20xf32>, vector<2x1x20xf32>, vector<2x1x20xf32>, vector<2x1x20xf32>, vector<2x1x20xf32>, vector<2x1x20xf32>, vector<2x1x20xf32>, vector<2x1x20xf32> -> vector<2x8x20xf32>
    %c0_14 = arith.constant 0 : index
    %c0_15 = arith.constant 0 : index
    %c0_16 = arith.constant 0 : index
    %59 = vector.load %arg2[%c0_14, %c0_15, %c0_16] : memref<2x8x20xf32, #tpu.memory_space<vmem>>, vector<2x8x20xf32>
    tpu.vector_store %arg2[%c0_14, %c0_15, %c0_16], %58 {strides = array<i32>} : memref<2x8x20xf32, #tpu.memory_space<vmem>>, vector<2x8x20xf32>,
    return
  }
}

</mosaic_0001>

<bundles_post_ra>
// kernel: tpu_custom_call.1
= control target key start
LH: loop header
LB: loop body
LE: loop exit
PB: predicated region body
PF: predicated region fallthrough
CT: control target
= control target key end

     0   :  { %vm31_vm0 = vcmask 1041408   ;;  %vm1281_vm1 = vmmov 1   ;;  %vm24_vm3 = vcmask 80896   ;;  %v1282_v5 = vmov 0.0|0.0   ;;  %s1479_s0 = inlined_call_operand.vmem [shape: f32[16,10], index: 0, kind: input, shape index: {}]   ;;  %s1480_s1 = inlined_call_operand.vmem [shape: f32[48,20], index: 1, kind: input, shape index: {}]   ;;  %s1481_s2 = inlined_call_operand.hbm [shape: f32[2,8,20], index: 2, kind: output, shape index: {}]  }
   0x1   :  { %v12_v0 = vld [vmem:[%s1480_s1] sm:$0xff]  ;;  %v13_v1 = vld [vmem:[%s1480_s1 + $0x8] sm:$0x3]  ;;  %vm1202_vm2 = vmpackc.low %vm31_vm0, %vm1281_vm1  ;;  %1207 = vmatprep.subr.bf16.mxu1 %v1282_v5  ;;  %vm1283_vm4 = vmmov 0   ;;  %v1284_v8 = vmov 0.0  }
   0x2   :  { %v18_v2 = vld [vmem:[%s1479_s0] sm:$0xff]  ;;  %v1201_v3 = vpack.c.bf16 %v13_v1, %v12_v0  ;;  %v14_v4 = vld [vmem:[%s1480_s1 + $0x10] sm:$0xff]  ;;  %v15_v6 = vld [vmem:[%s1480_s1 + $0x18] sm:$0xff]  ;;  %1135 = vmatprep.mubr.msk.f32.mxu1 %vm1283_vm4, %v1284_v8 }
   0x3   :  { %1126 = vmatprep.mubr.msk.f32.mxu0 %vm24_vm3, %v18_v2  ;;  %v1324_v7 = vpack.c.bf16 %v15_v6, %v14_v4 }
   0x4   :  { %1203 = vmatprep.subr.msk.bf16.mxu0 %vm1202_vm2, %v1201_v3 }
   0x5   :  { %7 = vsyncpa [#allocation3], 0  ;;  %1206 = vmatpush3.bf16.msk.msra.mxu0 %vm1202_vm2, %v1201_v3  ;;  %v19_v9 = vld [vmem:[%s1479_s0 + $0x8] sm:$0xff]  ;;  %1209 = vmatpush3.bf16.msra.mxu1 %v1324_v7  ;;  %v1337_v10 = vld [vmem:[%s1480_s1 + $0x20] sm:$0xf]  ;;  %vm180_vm5 = vcmask 1043456   ;;  %v114_v13 = vlaneseq }
   0x6   :  { %1210 = vmatprep.subr.bf16.mxu0 %v1282_v5  ;;  %1133 = vmatprep.subr.mxu1 %v1284_v8  ;;  %v1285_v11 = vmov 1983009808   ;;  %v1286_v16 = vmov 1934713408   ;;  %v1067_v18 = vld [vmem:[%s1480_s1 + $0x28] ss:$0 sm:$0xff] }
   0x7   :  { %v112_v12 = vunpack.c.l.s4 %v1285_v11  ;;  %v115_v15 = vshrl.u32 %v114_v13, 7  ;;  %v143_v17 = vunpack.c.l.s4 %v1286_v16  ;;  %v1287_v42 = vmov 1966171168   ;;  %s1288_s1 = smov [#allocation2]  }
   0x8   :  { %1127 = vmatmul.mubr.msk.f32.vlgmr.msra.gmra.mrb[0].mxu0 %vm24_vm3, %v19_v9  ;;  %v782_v43 = vunpack.c.l.s4 %v1287_v42  ;;  %vm176_vm6 = vcmask 162816   ;;  %vm1030_vm7 = vcmask 1040384   ;;  %vm1035_vm8 = vcmask 1042432   ;;  %s1056_s24 = sshll.u32 %s1288_s1, 4  ;;  %s1057_s24 = int_to_ptr.vmem [resolvable:$true] %s1056_s24 }
   0x9   :  { %1212 = vmatpush3.bf16.msra.mxu0 %v1324_v7  ;;  %1144 = vmatprep.mubr.msk.f32.mxu0 %vm1283_vm4, %v1284_v8  ;;  %v113_v14 = vunpack.c.0.s8 %v112_v12  ;;  %v144_v21 = vunpack.c.0.s8 %v143_v17  ;;  %v1383_v57 = vsub.s32 0, %v115_v15  ;;  %vm1040_vm9 = vcmask 1044480   ;;  %s1257_s25 = scalar_lea.vmem %s1057_s24, 256  ;;  %p1262_p1 = scmp.lt.s32.totalorder %s1057_s24, %s1057_s24 }
   0xa   :  { %1134 = vmatpush3.msk.msra.mxu1 %vm180_vm5, %v1337_v10  ;;  %1142 = vmatprep.subr.mxu0 %v1284_v8  ;;  %v783_v45 = vunpack.c.0.s8 %v782_v43  ;;  %vm1043_vm10 = vcmask 1045504   ;;  %vm1046_vm11 = vcmask 1046528   ;;  %p1258_p0 = scmp.ne.s32.totalorder %s1057_s24, %s1257_s25  ;;  %p1263_p2 = scmp.lt.s32.totalorder %s1257_s25, %s1257_s25 }
   0xb   :  { %1136 = vmatmul.mubr.f32.vlgmr.msra.gmra.mrb[0].mxu1 %v1284_v8  ;;  %1213 = vmatprep.subr.bf16.mxu1 %v1282_v5  ;;  %v116_v19 = vsub.s32 %v113_v14, %v115_v15  ;;  %v147_v30 = vsub.s32 %v144_v21, %v115_v15 }
   0xc   :  { %1215 = vmatpush3.bf16.msra.mxu1 %v1324_v7  ;;  %1153 = vmatprep.mubr.msk.f32.mxu1 %vm1283_vm4, %v1284_v8  ;;  %v1369_v46 = vsub.s32 %v783_v45, %v115_v15  ;;  %p1264_p3 = por %p1263_p2, %p1262_p1 }
   0xd   :  { %1143 = vmatpush3.msk.msra.mxu0 %vm180_vm5, %v1337_v10  ;;  %1151 = vmatprep.subr.mxu1 %v1284_v8 }
   0xe   :  { %1216 = vmatprep.subr.bf16.mxu0 %v1282_v5  ;;  %p1265_p4 = pnand %p1264_p3, %p1258_p0 }
  0x10   :  { %1152 = vmatpush3.msk.msra.mxu1 %vm180_vm5, %v1337_v10 }
  0x11   :  { %1219 = vmatprep.subr.bf16.mxu1 %v1282_v5 }
  0xdb   :  { %v1128_v20 = vpop.f32.mrb[0].mxu0 }
  0xdc   :  { %v107_v22 = vadd.f32 %v1128_v20, %v1067_v18  ;;  %v101_v23 = vpop.f32.mrb[1].mxu0 }
  0xdd   :  { %v102_v24 = vadd.f32 %v1067_v18, %v101_v23 }
  0xde   :  { %v125_v25 = vcombine.high %v107_v22, %v1284_v8  ;;  %v132_v26 = vrot.slane %v107_v22, %v116_v19  ;;  %v250_v27 = vpop.f32.mrb[0].mxu1 }
  0xdf   :  { %v110_v28 = vcombine.high %v102_v24, %v1284_v8  ;;  %v117_v29 = vrot.slane %v102_v24, %v116_v19  ;;  %v1137_v31 = vpop.f32.mrb[1].mxu1 }
  0xe0   :  { %v139_v32 = vrot.slane %v125_v25, %v116_v19 }
  0xe1   :  { %v124_v33 = vrot.slane %v110_v28, %v116_v19  ;;  %v140_v34 = vcombine.low %v117_v29, %v132_v26  ;;  %v141_v35 = vcombine.high %v117_v29, %v132_v26 }
  0xe3   :  { %v148_v36 = vrot.slane %v140_v34, %v147_v30  ;;  %v1363_v37 = vrot.slane %v141_v35, %v147_v30  ;;  %v156_v38 = vcombine.low %v124_v33, %v139_v32  ;;  %v157_v39 = vcombine.high %v124_v33, %v139_v32 }
  0xe5   :  { %v254_v40 = vadd.f32 %v250_v27, %v148_v36  ;;  %v1365_v41 = vrot.slane %v156_v38, %v147_v30  ;;  %v1367_v44 = vrot.slane %v157_v39, %v147_v30  ;;  %v172_v52 = vcombine.high %v148_v36, %v1284_v8 }
  0xe6   :  { %v173_v18 = vcombine.high %v1363_v37, %v1284_v8 }
  0xe7   :  { %1241 = vtanh.f32 %v254_v40  ;;  %v174_v42 = vcombine.high %v1365_v41, %v1284_v8 }
  0xf1   :  { %v1242_v47 = vpop.eup %1241 }
  0xf2   :  { %v787_v48 = vrot.slane %v1242_v47, %v1369_v46  ;;  %1145 = vmatmul.mubr.msk.f32.vlgmr.msra.gmra.mrb[2].mxu0 %vm176_vm6, %v1242_v47 }
  0xf3   :  { %1218 = vmatpush3.bf16.msra.mxu0 %v1324_v7  ;;  %1162 = vmatprep.mubr.msk.f32.mxu0 %vm1283_vm4, %v1284_v8 }
  0xf4   :  { %v788_v49 = vcombine.high %v787_v48, %v787_v48  ;;  %v795_v50 = vrot.slane %v787_v48, %v1369_v46  ;;  %1160 = vmatprep.subr.mxu0 %v1284_v8 }
  0xf6   :  { %v802_v51 = vrot.slane %v788_v49, %v1369_v46 }
  0xf7   :  { %1161 = vmatpush3.msk.msra.mxu0 %vm180_vm5, %v1337_v10 }
  0xf8   :  { %1222 = vmatprep.subr.bf16.mxu0 %v1282_v5 }
 0x1c5   :  { %v325_v53 = vpop.f32.mrb[2].mxu0 }
 0x1c6   :  { %v329_v54 = vadd.f32 %v325_v53, %v172_v52  ;;  %v1146_v55 = vpop.f32.mrb[3].mxu0 }
 0x1c8   :  { %1243 = vtanh.f32 %v329_v54 }
 0x1d2   :  { %v1244_v56 = vpop.eup %1243 }
 0x1d3   :  { %v811_v58 = vrot.slane %v1244_v56, %v1369_v46  ;;  %1154 = vmatmul.mubr.msk.f32.vlgmr.msra.gmra.mrb[2].mxu1 %vm176_vm6, %v1244_v56 }
 0x1d4   :  { %1221 = vmatpush3.bf16.msra.mxu1 %v1324_v7  ;;  %1171 = vmatprep.mubr.msk.f32.mxu1 %vm1283_vm4, %v1284_v8 }
 0x1d5   :  { %v812_v59 = vcombine.high %v811_v58, %v811_v58  ;;  %v819_v60 = vrot.slane %v811_v58, %v1369_v46  ;;  %1169 = vmatprep.subr.mxu1 %v1284_v8 }
 0x1d7   :  { %v826_v61 = vrot.slane %v812_v59, %v1369_v46  ;;  %v963_v62 = vrot.slane %v819_v60, %v1383_v57 }
 0x1d8   :  { %1170 = vmatpush3.msk.msra.mxu1 %vm180_vm5, %v1337_v10 }
 0x1d9   :  { %v967_v63 = vrot.slane %v826_v61, %v1383_v57  ;;  %v1031_v0 = vsel %vm1030_vm7, %v795_v50, %v963_v62  ;;  %1225 = vmatprep.subr.bf16.mxu1 %v1282_v5 }
 0x1db   :  { %v1032_v1 = vsel %vm1030_vm7, %v802_v51, %v967_v63 }
 0x2a6   :  { %v400_v2 = vpop.f32.mrb[2].mxu1 }
 0x2a7   :  { %v404_v3 = vadd.f32 %v400_v2, %v1363_v37  ;;  %v1155_v4 = vpop.f32.mrb[3].mxu1 }
 0x2a8   :  { %v175_v4 = vcombine.high %v1367_v44, %v1284_v8 }
 0x2a9   :  { %1245 = vtanh.f32 %v404_v3 }
 0x2b3   :  { %v1246_v6 = vpop.eup %1245 }
 0x2b4   :  { %v833_v9 = vrot.slane %v1246_v6, %v1369_v46  ;;  %1163 = vmatmul.mubr.msk.f32.vlgmr.msra.gmra.mrb[4].mxu0 %vm176_vm6, %v1246_v6 }
 0x2b5   :  { %1224 = vmatpush3.bf16.msra.mxu0 %v1324_v7  ;;  %1180 = vmatprep.mubr.msk.f32.mxu0 %vm1283_vm4, %v1284_v8 }
 0x2b6   :  { %v834_v11 = vcombine.high %v833_v9, %v833_v9  ;;  %v841_v12 = vrot.slane %v833_v9, %v1369_v46  ;;  %1178 = vmatprep.subr.mxu0 %v1284_v8 }
 0x2b8   :  { %v848_v13 = vrot.slane %v834_v11, %v1369_v46  ;;  %v973_v14 = vrot.slane %v841_v12, %v1383_v57 }
 0x2b9   :  { %1179 = vmatpush3.msk.msra.mxu0 %vm180_vm5, %v1337_v10 }
 0x2ba   :  { %v977_v15 = vrot.slane %v848_v13, %v1383_v57  ;;  %v1033_v16 = vsel %vm31_vm0, %v1031_v0, %v973_v14  ;;  %1228 = vmatprep.subr.bf16.mxu0 %v1282_v5 }
 0x2bc   :  { %v1034_v17 = vsel %vm31_vm0, %v1032_v1, %v977_v15 }
 0x387   :  { %v475_v19 = vpop.f32.mrb[4].mxu0 }
 0x388   :  { %v479_v20 = vadd.f32 %v475_v19, %v173_v18  ;;  %v1164_v21 = vpop.f32.mrb[5].mxu0 }
 0x38a   :  { %1247 = vtanh.f32 %v479_v20 }
 0x394   :  { %v1248_v22 = vpop.eup %1247 }
 0x395   :  { %v855_v23 = vrot.slane %v1248_v22, %v1369_v46  ;;  %1172 = vmatmul.mubr.msk.f32.vlgmr.msra.gmra.mrb[4].mxu1 %vm176_vm6, %v1248_v22 }
 0x396   :  { %1227 = vmatpush3.bf16.msra.mxu1 %v1324_v7  ;;  %1189 = vmatprep.mubr.msk.f32.mxu1 %vm1283_vm4, %v1284_v8 }
 0x397   :  { %v856_v5 = vcombine.high %v855_v23, %v855_v23  ;;  %v863_v24 = vrot.slane %v855_v23, %v1369_v46  ;;  %1187 = vmatprep.subr.mxu1 %v1284_v8 }
 0x399   :  { %v870_v25 = vrot.slane %v856_v5, %v1369_v46  ;;  %v983_v26 = vrot.slane %v863_v24, %v1383_v57 }
 0x39a   :  { %1188 = vmatpush3.msk.msra.mxu1 %vm180_vm5, %v1337_v10 }
 0x39b   :  { %v987_v27 = vrot.slane %v870_v25, %v1383_v57  ;;  %v1036_v28 = vsel %vm1035_vm8, %v1033_v16, %v983_v26 }
 0x39d   :  { %v1037_v29 = vsel %vm1035_vm8, %v1034_v17, %v987_v27 }
 0x468   :  { %v550_v30 = vpop.f32.mrb[4].mxu1 }
 0x469   :  { %v554_v31 = vadd.f32 %v550_v30, %v1365_v41  ;;  %v1173_v32 = vpop.f32.mrb[5].mxu1 }
 0x46b   :  { %1249 = vtanh.f32 %v554_v31 }
 0x475   :  { %v1250_v33 = vpop.eup %1249 }
 0x476   :  { %v877_v34 = vrot.slane %v1250_v33, %v1369_v46  ;;  %1181 = vmatmul.mubr.msk.f32.vlgmr.msra.gmra.mrb[6].mxu0 %vm176_vm6, %v1250_v33 }
 0x477   :  { %1230 = vmatpush3.bf16.msra.mxu0 %v1324_v7  ;;  %1198 = vmatprep.mubr.msk.f32.mxu0 %vm1283_vm4, %v1284_v8 }
 0x478   :  { %v878_v35 = vcombine.high %v877_v34, %v877_v34  ;;  %v885_v36 = vrot.slane %v877_v34, %v1369_v46  ;;  %1196 = vmatprep.subr.mxu0 %v1284_v8 }
 0x47a   :  { %v892_v37 = vrot.slane %v878_v35, %v1369_v46  ;;  %v993_v38 = vrot.slane %v885_v36, %v1383_v57 }
 0x47b   :  { %1197 = vmatpush3.msk.msra.mxu0 %vm180_vm5, %v1337_v10 }
 0x47c   :  { %v997_v39 = vrot.slane %v892_v37, %v1383_v57  ;;  %v1038_v40 = vsel %vm180_vm5, %v1036_v28, %v993_v38 }
 0x47e   :  { %v1039_v7 = vsel %vm180_vm5, %v1037_v29, %v997_v39 }
 0x549   :  { %v625_v43 = vpop.f32.mrb[6].mxu0 }
 0x54a   :  { %v629_v45 = vadd.f32 %v625_v43, %v174_v42  ;;  %v1182_v47 = vpop.f32.mrb[7].mxu0 }
 0x54c   :  { %1251 = vtanh.f32 %v629_v45 }
 0x556   :  { %v1252_v48 = vpop.eup %1251 }
 0x557   :  { %v899_v49 = vrot.slane %v1252_v48, %v1369_v46  ;;  %1190 = vmatmul.mubr.msk.f32.vlgmr.msra.gmra.mrb[6].mxu1 %vm176_vm6, %v1252_v48 }
 0x559   :  { %v900_v50 = vcombine.high %v899_v49, %v899_v49  ;;  %v907_v10 = vrot.slane %v899_v49, %v1369_v46 }
 0x55b   :  { %v914_v51 = vrot.slane %v900_v50, %v1369_v46  ;;  %v1003_v52 = vrot.slane %v907_v10, %v1383_v57 }
 0x55d   :  { %v1007_v53 = vrot.slane %v914_v51, %v1383_v57  ;;  %v1041_v41 = vsel %vm1040_vm9, %v1038_v40, %v1003_v52 }
 0x55f   :  { %v1042_v54 = vsel %vm1040_vm9, %v1039_v7, %v1007_v53 }
 0x62a   :  { %v700_v55 = vpop.f32.mrb[6].mxu1 }
 0x62b   :  { %v704_v56 = vadd.f32 %v700_v55, %v1367_v44  ;;  %v1191_v58 = vpop.f32.mrb[7].mxu1 }
 0x62d   :  { %1253 = vtanh.f32 %v704_v56 }
 0x637   :  { %v1254_v59 = vpop.eup %1253 }
 0x638   :  { %v921_v60 = vrot.slane %v1254_v59, %v1369_v46  ;;  %1199 = vmatmul.mubr.msk.f32.vlgmr.msra.gmra.mrb[8].mxu0 %vm176_vm6, %v1254_v59 }
 0x63a   :  { %v922_v61 = vcombine.high %v921_v60, %v921_v60  ;;  %v929_v62 = vrot.slane %v921_v60, %v1369_v46 }
 0x63c   :  { %v936_v63 = vrot.slane %v922_v61, %v1369_v46  ;;  %v1013_v0 = vrot.slane %v929_v62, %v1383_v57 }
 0x63e   :  { %v1017_v1 = vrot.slane %v936_v63, %v1383_v57  ;;  %v1044_v2 = vsel %vm1043_vm10, %v1041_v41, %v1013_v0 }
 0x640   :  { %v1045_v3 = vsel %vm1043_vm10, %v1042_v54, %v1017_v1 }
 0x70b   :  { %v775_v6 = vpop.f32.mrb[8].mxu0 }
 0x70c   :  { %v779_v9 = vadd.f32 %v775_v6, %v175_v4  ;;  %v1200_v11 = vpop.f32.mrb[9].mxu0 }
 0x70e   :  { %1255 = vtanh.f32 %v779_v9 }
 0x718   :  { %v1256_v12 = vpop.eup %1255 }
 0x719   :  { %v944_v13 = vrot.slane %v1256_v12, %v1369_v46 }
 0x71b   :  { %v945_v14 = vcombine.high %v944_v13, %v944_v13  ;;  %v952_v15 = vrot.slane %v944_v13, %v1369_v46 }
 0x71d   :  { %v959_v16 = vrot.slane %v945_v14, %v1369_v46  ;;  %v1023_v17 = vrot.slane %v952_v15, %v1383_v57 }
 0x71f   :  { %v1027_v18 = vrot.slane %v959_v16, %v1383_v57  ;;  %v1047_v8 = vsel %vm1046_vm11, %v1044_v2, %v1023_v17 }
 0x720   :  { %1049 = vst.msk [vmem:[#allocation2] sm:$0xff] %vm176_vm6, %v1047_v8 }
 0x721   :  { %v1048_v44 = vsel %vm1046_vm11, %v1045_v3, %v1027_v18 }
 0x722   :  { %1050 = vst.msk [vmem:[#allocation2 + $0x8] sm:$0xff] %vm176_vm6, %v1048_v44 }
 0x723   :  { %1268 = shalt.err (!%p1265_p4)
}
 0x724   :  { %s1269_s28 = scalar_lea.hbm %s1481_s2, 256 }
 0x725   :  { %p1270_p5 = scmp.ne.s32.totalorder %s1481_s2, %s1269_s28  ;;  %p1273_p6 = scmp.lt.u32.totalorder %s1269_s28, %s1481_s2 }
 0x727   :  { %p1275_p7 = pnand %p1273_p6, %p1270_p5 }
 0x729   :  { %1278 = shalt.err (!%p1275_p7)
}
 0x72a   :  { %s1289_s5 = smov 128   ;;  %s1290_s6 = smov 8  }
 0x72b   :  { %1062 = dma.vmem_to_hbm [thread:$0]  %s1057_s24, 256, %s1481_s2, [#allocation3], %s1289_s5, %s1289_s5, %s1290_s6  }
 0x72c   :  { %1279 = dma.done.wait [#allocation3], 256  }
 0x72d   :  { %1280 = vsyncadd [#allocation3], 4294967040 }
 0x72e   :  { %1066 = vsyncpa [#allocation3], 1 }

</bundles_post_ra>
